<compile_context>
chip_gen: v5e
topology: v5e:2x2
jax: 0.10.0
libtpu: 0.0.40
codegen_flags: <defaults>
</compile_context>

<pallas_src>
import functools

import jax
import jax.numpy as jnp
from jax.experimental import pallas as pl
from jax.experimental.pallas import tpu as pltpu

EPS = 1e-5  # nn.LayerNorm default


def _round_up(n, m):
    return ((n + m - 1) // m) * m


def _token_mamba_kernel(x_ref, w1_ref, b1_ref, wm_ref, b2_ref,
                        out_ref, res_ref, normed_ref, *, inv_dim):
    """Grid: (row tiles i, mixer output-column tiles j)."""
    j = pl.program_id(1)

    @pl.when(j == 0)
    def _():
        x = x_ref[...]
        # in2out: residual = x @ W1 + b1   (MXU, f32 accumulation)
        res = jnp.dot(x, w1_ref[...], preferred_element_type=jnp.float32)
        res = res + b1_ref[...]
        res_ref[...] = res.astype(res_ref.dtype)

        # One-pass LayerNorm statistics over the *real* feature count.
        # Padded feature columns of `res` are exactly zero, so sums are exact.
        mean = jnp.sum(res, axis=-1, keepdims=True) * inv_dim
        meansq = jnp.sum(res * res, axis=-1, keepdims=True) * inv_dim
        var = jnp.maximum(meansq - mean * mean, 0.0)
        normed = (res - mean) * jax.lax.rsqrt(var + EPS)
        normed_ref[...] = normed.astype(normed_ref.dtype)

    # mixer (modeled as Linear), with LN affine pre-folded on the host:
    #   out = normed @ (gamma[:,None] * Wm) + (beta @ Wm + bm)
    out = jnp.dot(normed_ref[...], wm_ref[...], preferred_element_type=jnp.float32)
    out_ref[...] = (out + b2_ref[...]).astype(out_ref.dtype)


def token_mamba_forward(hidden_states, params, *, tm=256,
                        compute_dtype=jnp.float32,
                        vmem_budget_bytes=40 * 1024 * 1024):
    """hidden_states: (B, L, in_dim). Returns (mixed, residual), both (B, L, dim)."""
    out_dtype = hidden_states.dtype
    B, L, in_dim = hidden_states.shape
    dim = params["w1"].shape[1]
    rows = B * L

    w_bytes = jnp.dtype(compute_dtype).itemsize
    act_bytes = w_bytes

    # Lane-dense padded feature dims (multiple of 128); row tile multiple of 16.
    in_dim_p = _round_up(in_dim, 128)
    dim_p = _round_up(dim, 128)
    tm = max(16, min(int(tm), _round_up(rows, 16)))
    rows_p = _round_up(rows, tm)

    # Fold LayerNorm affine into the mixer weight / bias (host side, f32).
    gamma = params["gamma"].astype(jnp.float32)
    beta = params["beta"].astype(jnp.float32)
    wm_f32 = params["wm"].astype(jnp.float32)
    wm_folded = gamma[:, None] * wm_f32
    b2_folded = beta @ wm_f32 + params["bm"].astype(jnp.float32)

    # Zero-pad everything (zero padding + real-dim LN divisors keeps results exact).
    x2d = jnp.zeros((rows_p, in_dim_p), compute_dtype).at[:rows, :in_dim].set(
        hidden_states.reshape(rows, in_dim).astype(compute_dtype))
    w1 = jnp.zeros((in_dim_p, dim_p), compute_dtype).at[:in_dim, :dim].set(
        params["w1"].astype(compute_dtype))
    b1 = jnp.zeros((1, dim_p), jnp.float32).at[0, :dim].set(
        params["b1"].astype(jnp.float32))
    wm = jnp.zeros((dim_p, dim_p), compute_dtype).at[:dim, :dim].set(
        wm_folded.astype(compute_dtype))
    b2 = jnp.zeros((1, dim_p), jnp.float32).at[0, :dim].set(b2_folded)

    # Estimate VMEM working set (Pallas double-buffers blocks by default) and pick the
    # mixer-weight column tile tn so it fits the budget (v7x: 64 MiB/TC physical).
    def est(tn_):
        dbl = 2
        return (dbl * (tm * in_dim_p * act_bytes       # x tile
                       + in_dim_p * dim_p * w_bytes    # W1 (fully resident)
                       + dim_p * 4                     # b1
                       + dim_p * tn_ * w_bytes         # Wm column tile
                       + tn_ * 4                       # folded bias tile
                       + tm * tn_ * 4                  # mixed output tile
                       + tm * dim_p * 4)               # residual tile
                + tm * dim_p * act_bytes)              # normed scratch

    tn = 128
    for cand in range(dim_p, 127, -128):
        if dim_p % cand == 0 and est(cand) <= vmem_budget_bytes:
            tn = cand
            break
    # TODO(synk): for very large in_dim*dim (W1 alone > budget) W1 would also need a
    # K/N tiling; not needed at these model sizes.
    vmem_limit = int(min(max(int(est(tn) * 1.3) + (2 << 20), 32 << 20), 56 << 20))

    grid = (rows_p // tm, dim_p // tn)
    kernel = functools.partial(_token_mamba_kernel, inv_dim=float(1.0 / dim))

    out, res = pl.pallas_call(
        kernel,
        out_shape=(
            jax.ShapeDtypeStruct((rows_p, dim_p), out_dtype),
            jax.ShapeDtypeStruct((rows_p, dim_p), out_dtype),
        ),
        grid_spec=pltpu.PrefetchScalarGridSpec(
            num_scalar_prefetch=0,
            grid=grid,
            in_specs=[
                pl.BlockSpec((tm, in_dim_p), lambda i, j: (i, 0)),    # x rows
                pl.BlockSpec((in_dim_p, dim_p), lambda i, j: (0, 0)),  # W1 (full)
                pl.BlockSpec((1, dim_p), lambda i, j: (0, 0)),         # b1
                pl.BlockSpec((dim_p, tn), lambda i, j: (0, j)),        # Wm column tile
                pl.BlockSpec((1, tn), lambda i, j: (0, j)),            # folded bias tile
            ],
            out_specs=[
                pl.BlockSpec((tm, tn), lambda i, j: (i, j)),           # mixed output
                pl.BlockSpec((tm, dim_p), lambda i, j: (i, 0)),        # residual (revisited over j)
            ],
            scratch_shapes=[pltpu.VMEM((tm, dim_p), compute_dtype)],   # normed rows
        ),
        compiler_params=pltpu.CompilerParams(
            dimension_semantics=("parallel", "arbitrary"),
            vmem_limit_bytes=vmem_limit),
    )(x2d, w1, b1, wm, b2)

    out = out[:rows, :dim].reshape(B, L, dim)
    res = res[:rows, :dim].reshape(B, L, dim)
    return out, res


def init_params(key, in_dim, dim):
    k1, k2, k3, k4, k5, k6 = jax.random.split(key, 6)
    return {
        "w1": jax.random.normal(k1, (in_dim, dim), jnp.float32) * 0.05,
        "b1": jax.random.normal(k2, (dim,), jnp.float32) * 0.01,
        "gamma": 1.0 + 0.1 * jax.random.normal(k5, (dim,), jnp.float32),
        "beta": 0.05 * jax.random.normal(k6, (dim,), jnp.float32),
        "wm": jax.random.normal(k3, (dim, dim), jnp.float32) * 0.05,
        "bm": jax.random.normal(k4, (dim,), jnp.float32) * 0.01,
    }


def reference_forward(hidden_states, params):
    res = jnp.einsum("bld,de->ble", hidden_states, params["w1"]) + params["b1"]
    mean = jnp.mean(res, axis=-1, keepdims=True)
    var = jnp.mean((res - mean) ** 2, axis=-1, keepdims=True)
    h = (res - mean) * jax.lax.rsqrt(var + EPS)
    h = h * params["gamma"] + params["beta"]
    out = jnp.einsum("bld,de->ble", h, params["wm"]) + params["bm"]
    return out, res


if __name__ == "__main__":
    B, L, in_dim, dim = 2, 8, 16, 32
    key = jax.random.PRNGKey(0)
    kx, kp = jax.random.split(key)
    hidden_states = jax.random.normal(kx, (B, L, in_dim), jnp.float32)
    params = init_params(kp, in_dim, dim)

    ref_out, ref_res = reference_forward(hidden_states, params)

    # Full-f32 path: exact check against the reference.
    out, res = token_mamba_forward(hidden_states, params, compute_dtype=jnp.float32)
    out, res = jax.block_until_ready(out), jax.block_until_ready(res)
    assert out.shape == (B, L, dim) and res.shape == (B, L, dim)
    assert jnp.allclose(out, ref_out, atol=1e-4, rtol=1e-4)
    assert jnp.allclose(res, ref_res, atol=1e-4, rtol=1e-4)

    # bf16 MXU path (f32 accumulation + f32 LayerNorm): mixed-precision tolerance.
    out_bf, res_bf = token_mamba_forward(hidden_states, params, compute_dtype=jnp.bfloat16)
    out_bf, res_bf = jax.block_until_ready(out_bf), jax.block_until_ready(res_bf)
    assert jnp.allclose(out_bf, ref_out, atol=5e-2, rtol=5e-2)
    assert jnp.allclose(res_bf, ref_res, atol=5e-2, rtol=5e-2)

    print("KERNEL_OK")
</pallas_src>

<mosaic_0001>
module attributes {stable_mosaic.version = 11 : i64} {
  func.func @_token_mamba_kernel(%arg0: i32, %arg1: i32, %arg2: memref<16x128xf32, #tpu.memory_space<vmem>>, %arg3: memref<128x128xf32, #tpu.memory_space<vmem>>, %arg4: memref<1x128xf32, #tpu.memory_space<vmem>>, %arg5: memref<128x128xf32, #tpu.memory_space<vmem>>, %arg6: memref<1x128xf32, #tpu.memory_space<vmem>>, %arg7: memref<16x128xf32, #tpu.memory_space<vmem>>, %arg8: memref<16x128xf32, #tpu.memory_space<vmem>>, %arg9: memref<16x128xf32, #tpu.memory_space<vmem>>) attributes {dimension_semantics = [#tpu.dimension_semantics<parallel>, #tpu.dimension_semantics<arbitrary>], iteration_bounds = array<i64: 1, 1>, scalar_prefetch = 0 : i64, scratch_operands = 1 : i64, tpu.core_type = #tpu.core_type<tc>, window_params = [{transform_indices = @transform_0, window_bounds = array<i64: 16, 128>}, {pipeline_mode = #tpu.pipeline_mode<synchronous>, transform_indices = @transform_1, window_bounds = array<i64: 128, 128>}, {pipeline_mode = #tpu.pipeline_mode<synchronous>, transform_indices = @transform_2, window_bounds = array<i64: 1, 128>}, {transform_indices = @transform_3, window_bounds = array<i64: 128, 128>}, {transform_indices = @transform_4, window_bounds = array<i64: 1, 128>}, {transform_indices = @transform_5, window_bounds = array<i64: 16, 128>}, {transform_indices = @transform_6, window_bounds = array<i64: 16, 128>}]} {
    %c0_i32 = arith.constant 0 : i32
    %0 = arith.cmpi eq, %arg1, %c0_i32 : i32
    %1 = arith.extui %0 : i1 to i32
    %c0_i32_0 = arith.constant 0 : i32
    %2 = arith.cmpi ne, %1, %c0_i32_0 : i32
    scf.if %2 {
      %c0_8 = arith.constant 0 : index
      %c0_9 = arith.constant 0 : index
      %10 = vector.load %arg2[%c0_8, %c0_9] : memref<16x128xf32, #tpu.memory_space<vmem>>, vector<16x128xf32>
      %c0_10 = arith.constant 0 : index
      %c0_11 = arith.constant 0 : index
      %11 = vector.load %arg3[%c0_10, %c0_11] : memref<128x128xf32, #tpu.memory_space<vmem>>, vector<128x128xf32>
      %cst_12 = arith.constant dense<0.000000e+00> : vector<16x128xf32>
      %12 = tpu.matmul %10, %11, %cst_12 {dimension_numbers = #tpu.dot_dimension_numbers<[1], [0], [0], [1], [0, 0, 1, 1], [], []>} : vector<16x128xf32>, vector<128x128xf32>, vector<16x128xf32> -> vector<16x128xf32>
      %c0_13 = arith.constant 0 : index
      %c0_14 = arith.constant 0 : index
      %13 = vector.load %arg4[%c0_13, %c0_14] : memref<1x128xf32, #tpu.memory_space<vmem>>, vector<1x128xf32>
      %14 = vector.broadcast %13 : vector<1x128xf32> to vector<16x128xf32>
      %15 = arith.addf %12, %14 : vector<16x128xf32>
      %c0_15 = arith.constant 0 : index
      %c0_16 = arith.constant 0 : index
      %16 = vector.load %arg8[%c0_15, %c0_16] : memref<16x128xf32, #tpu.memory_space<vmem>>, vector<16x128xf32>
      tpu.vector_store %arg8[%c0_15, %c0_16], %15 {strides = array<i32>} : memref<16x128xf32, #tpu.memory_space<vmem>>, vector<16x128xf32>,
      %cst_17 = arith.constant dense<0.000000e+00> : vector<16xf32>
      %17 = vector.multi_reduction <add>, %15, %cst_17 [1] : vector<16x128xf32> to vector<16xf32>
      %18 = vector.shape_cast %17 : vector<16xf32> to vector<16x1xf32>
      %cst_18 = arith.constant 3.125000e-02 : f32
      %19 = vector.broadcast %cst_18 : f32 to vector<16x1xf32>
      %20 = arith.mulf %18, %19 : vector<16x1xf32>
      %21 = arith.mulf %15, %15 : vector<16x128xf32>
      %cst_19 = arith.constant dense<0.000000e+00> : vector<16xf32>
      %22 = vector.multi_reduction <add>, %21, %cst_19 [1] : vector<16x128xf32> to vector<16xf32>
      %23 = vector.shape_cast %22 : vector<16xf32> to vector<16x1xf32>
      %cst_20 = arith.constant 3.125000e-02 : f32
      %24 = vector.broadcast %cst_20 : f32 to vector<16x1xf32>
      %25 = arith.mulf %23, %24 : vector<16x1xf32>
      %26 = arith.mulf %20, %20 : vector<16x1xf32>
      %27 = arith.subf %25, %26 : vector<16x1xf32>
      %cst_21 = arith.constant 0.000000e+00 : f32
      %28 = vector.broadcast %cst_21 : f32 to vector<16x1xf32>
      %29 = arith.maximumf %27, %28 : vector<16x1xf32>
      %30 = vector.broadcast %20 : vector<16x1xf32> to vector<16x128xf32>
      %31 = arith.subf %15, %30 : vector<16x128xf32>
      %cst_22 = arith.constant 9.99999974E-6 : f32
      %32 = vector.broadcast %cst_22 : f32 to vector<16x1xf32>
      %33 = arith.addf %29, %32 : vector<16x1xf32>
      %34 = math.rsqrt %33 : vector<16x1xf32>
      %35 = vector.broadcast %34 : vector<16x1xf32> to vector<16x128xf32>
      %36 = arith.mulf %31, %35 : vector<16x128xf32>
      %c0_23 = arith.constant 0 : index
      %c0_24 = arith.constant 0 : index
      %37 = vector.load %arg9[%c0_23, %c0_24] : memref<16x128xf32, #tpu.memory_space<vmem>>, vector<16x128xf32>
      tpu.vector_store %arg9[%c0_23, %c0_24], %36 {strides = array<i32>} : memref<16x128xf32, #tpu.memory_space<vmem>>, vector<16x128xf32>,
    } else {
    }
    %c0 = arith.constant 0 : index
    %c0_1 = arith.constant 0 : index
    %3 = vector.load %arg9[%c0, %c0_1] : memref<16x128xf32, #tpu.memory_space<vmem>>, vector<16x128xf32>
    %c0_2 = arith.constant 0 : index
    %c0_3 = arith.constant 0 : index
    %4 = vector.load %arg5[%c0_2, %c0_3] : memref<128x128xf32, #tpu.memory_space<vmem>>, vector<128x128xf32>
    %cst = arith.constant dense<0.000000e+00> : vector<16x128xf32>
    %5 = tpu.matmul %3, %4, %cst {dimension_numbers = #tpu.dot_dimension_numbers<[1], [0], [0], [1], [0, 0, 1, 1], [], []>} : vector<16x128xf32>, vector<128x128xf32>, vector<16x128xf32> -> vector<16x128xf32>
    %c0_4 = arith.constant 0 : index
    %c0_5 = arith.constant 0 : index
    %6 = vector.load %arg6[%c0_4, %c0_5] : memref<1x128xf32, #tpu.memory_space<vmem>>, vector<1x128xf32>
    %7 = vector.broadcast %6 : vector<1x128xf32> to vector<16x128xf32>
    %8 = arith.addf %5, %7 : vector<16x128xf32>
    %c0_6 = arith.constant 0 : index
    %c0_7 = arith.constant 0 : index
    %9 = vector.load %arg7[%c0_6, %c0_7] : memref<16x128xf32, #tpu.memory_space<vmem>>, vector<16x128xf32>
    tpu.vector_store %arg7[%c0_6, %c0_7], %8 {strides = array<i32>} : memref<16x128xf32, #tpu.memory_space<vmem>>, vector<16x128xf32>,
    return
  }
  func.func @transform_0(%arg0: i32, %arg1: i32) -> (i32, i32) {
    %c0_i32 = arith.constant 0 : i32
    %c0_i32_0 = arith.constant 0 : i32
    return %arg0, %c0_i32 : i32, i32
  }
  func.func @transform_1(%arg0: i32, %arg1: i32) -> (i32, i32) {
    %c0_i32 = arith.constant 0 : i32
    %c0_i32_0 = arith.constant 0 : i32
    %c0_i32_1 = arith.constant 0 : i32
    return %c0_i32, %c0_i32_0 : i32, i32
  }
  func.func @transform_2(%arg0: i32, %arg1: i32) -> (i32, i32) {
    %c0_i32 = arith.constant 0 : i32
    %c0_i32_0 = arith.constant 0 : i32
    %c0_i32_1 = arith.constant 0 : i32
    return %c0_i32, %c0_i32_0 : i32, i32
  }
  func.func @transform_3(%arg0: i32, %arg1: i32) -> (i32, i32) {
    %c0_i32 = arith.constant 0 : i32
    %c0_i32_0 = arith.constant 0 : i32
    return %c0_i32, %arg1 : i32, i32
  }
  func.func @transform_4(%arg0: i32, %arg1: i32) -> (i32, i32) {
    %c0_i32 = arith.constant 0 : i32
    %c0_i32_0 = arith.constant 0 : i32
    return %c0_i32, %arg1 : i32, i32
  }
  func.func @transform_5(%arg0: i32, %arg1: i32) -> (i32, i32) {
    %c0_i32 = arith.constant 0 : i32
    return %arg0, %arg1 : i32, i32
  }
  func.func @transform_6(%arg0: i32, %arg1: i32) -> (i32, i32) {
    %c0_i32 = arith.constant 0 : i32
    %c0_i32_0 = arith.constant 0 : i32
    return %arg0, %c0_i32 : i32, i32
  }
}

</mosaic_0001>

<bundles_post_ra>
// kernel: tpu_custom_call.1
= control target key start
LH: loop header
LB: loop body
LE: loop exit
PB: predicated region body
PF: predicated region fallthrough
CT: control target
= control target key end

     0   :  { %12 = vsyncpa [#allocation4], 0  ;;  %s520_s0 = inlined_call_operand.hbm [shape: f32[16,128], index: 0, kind: input, shape index: {}]   ;;  %s521_s1 = inlined_call_operand.hbm [shape: f32[128,128], index: 1, kind: input, shape index: {}]   ;;  %s522_s2 = inlined_call_operand.vmem [shape: f32[1,128], index: 2, kind: input, shape index: {}]   ;;  %s523_s3 = inlined_call_operand.hbm [shape: f32[128,128], index: 3, kind: input, shape index: {}]   ;;  %s524_s4 = inlined_call_operand.vmem [shape: f32[1,128], index: 4, kind: input, shape index: {}]   ;;  %s525_s5 = inlined_call_operand.hbm [shape: f32[16,128], index: 5, kind: output, shape index: {0}]   ;;  %s526_s6 = inlined_call_operand.hbm [shape: f32[16,128], index: 6, kind: output, shape index: {1}]  }
   0x1   :  { %13 = vsyncpa [#allocation7], 0 }
   0x2   :  { %14 = vsyncpa [#allocation5], 0 }
   0x3   :  { %15 = vsyncpa [#allocation11], 0  ;;  %s33_s23 = sshll.u32 %s521_s1, 4  ;;  %s428_s24 = smov [#allocation6]   ;;  %s34_s23 = int_to_ptr.hbm [resolvable:$true] %s33_s23 }
   0x4   :  { %s35_s25 = sshll.u32 %s428_s24, 4  ;;  %s20_s28 = sshll.u32 %s520_s0, 4  ;;  %s36_s25 = int_to_ptr.vmem [resolvable:$true] %s35_s25  ;;  %s21_s28 = int_to_ptr.hbm [resolvable:$true] %s20_s28 }
   0x5   :  { %s429_s29 = smov 128   ;;  %s430_s30 = smov 8  }
   0x6   :  { %41 = dma.hbm_to_vmem [thread:$0]  %s34_s23, 2048, %s36_s25, [#allocation7], %s429_s29, %s429_s29, %s430_s30  }
   0x7   :  { %s431_s7 = smov [#allocation3]   ;;  %s48_s1 = sshll.u32 %s523_s3, 4  ;;  %s49_s1 = int_to_ptr.hbm [resolvable:$true] %s48_s1 }
   0x8   :  { %s22_s8 = sshll.u32 %s431_s7, 4  ;;  %s432_s0 = smov [#allocation8]   ;;  %s23_s8 = int_to_ptr.vmem [resolvable:$true] %s22_s8 }
   0x9   :  { %28 = dma.hbm_to_vmem [thread:$0]  %s21_s28, 256, %s23_s8, [#allocation4], %s429_s29, %s429_s29, %s430_s30  }
   0xa   :  { %s50_s11 = sshll.u32 %s432_s0, 4  ;;  %s51_s11 = int_to_ptr.vmem [resolvable:$true] %s50_s11 }
   0xb   :  { %56 = dma.hbm_to_vmem [thread:$0]  %s49_s1, 2048, %s51_s11, [#allocation7], %s429_s29, %s429_s29, %s430_s30  }
   0xc   :  { %420 = dma.done.wait [#allocation4], 256  }
   0xd   :  { %421 = vsyncadd [#allocation4], 4294967040 }
   0xe   :  { %422 = dma.done.wait [#allocation7], 4096  }
   0xf   :  { %423 = vsyncadd [#allocation7], 4294963200  ;;  %v92_v0 = vld [vmem:[#allocation6 + $0x78] sm:$0xff]  ;;  %v91_v1 = vld [vmem:[#allocation6 + $0x70] sm:$0xff]  ;;  %s236_s16 = sshll.u32 %s526_s6, 4  ;;  %s434_s19 = smov [#allocation9]   ;;  %s237_s16 = int_to_ptr.hbm [resolvable:$true] %s236_s16 }
  0x10   :  { %97 = vmatpush.msra.mxu0 %v92_v0  ;;  %255 = vmatpush.msra.mxu2 %v92_v0  ;;  %v90_v2 = vld [vmem:[#allocation6 + $0x68] sm:$0xff]  ;;  %v89_v3 = vld [vmem:[#allocation6 + $0x60] sm:$0xff]  ;;  %v88_v4 = vld [vmem:[#allocation6 + $0x58] sm:$0xff]  ;;  %s221_s20 = sshll.u32 %s434_s19, 4  ;;  %s223_s23 = sshll.u32 %s525_s5, 4  ;;  %s222_s20 = int_to_ptr.vmem [resolvable:$true] %s221_s20  ;;  %s224_s23 = int_to_ptr.hbm [resolvable:$true] %s223_s23 }
  0x11   :  { %v87_v5 = vld [vmem:[#allocation6 + $0x50] sm:$0xff]  ;;  %v86_v6 = vld [vmem:[#allocation6 + $0x48] sm:$0xff]  ;;  %v85_v7 = vld [vmem:[#allocation6 + $0x40] sm:$0xff] }
  0x12   :  { %98 = vmatpush.msra.mxu0 %v91_v1  ;;  %256 = vmatpush.msra.mxu2 %v91_v1  ;;  %v84_v8 = vld [vmem:[#allocation6 + $0x38] sm:$0xff]  ;;  %v83_v9 = vld [vmem:[#allocation6 + $0x30] sm:$0xff]  ;;  %v82_v10 = vld [vmem:[#allocation6 + $0x28] sm:$0xff] }
  0x13   :  { %v81_v11 = vld [vmem:[#allocation6 + $0x20] sm:$0xff]  ;;  %v80_v12 = vld [vmem:[#allocation6 + $0x18] sm:$0xff]  ;;  %v79_v13 = vld [vmem:[#allocation6 + $0x10] sm:$0xff] }
  0x14   :  { %99 = vmatpush.msra.mxu0 %v90_v2  ;;  %257 = vmatpush.msra.mxu2 %v90_v2  ;;  %v78_v14 = vld [vmem:[#allocation6 + $0x8] sm:$0xff]  ;;  %v77_v15 = vld [vmem:[#allocation6] sm:$0xff]  ;;  %v75_v16 = vld [vmem:[#allocation3] sm:$0xff] }
  0x15   :  { %v76_v17 = vld [vmem:[#allocation3 + $0x8] sm:$0xff]  ;;  %v294_v18 = vld [vmem:[%s522_s2] ss:$0 sm:$0xff]  ;;  %v185_v27 = vld [vmem:[#allocation8 + $0x68] sm:$0xff]  ;;  %s433_s2 = smov [#allocation10]  }
  0x16   :  { %100 = vmatpush.msra.mxu0 %v89_v3  ;;  %258 = vmatpush.msra.mxu2 %v89_v3  ;;  %v187_v25 = vld [vmem:[#allocation8 + $0x78] sm:$0xff]  ;;  %v186_v26 = vld [vmem:[#allocation8 + $0x70] sm:$0xff]  ;;  %v184_v28 = vld [vmem:[#allocation8 + $0x60] sm:$0xff]  ;;  %s234_s13 = sshll.u32 %s433_s2, 4  ;;  %s235_s13 = int_to_ptr.vmem [resolvable:$true] %s234_s13 }
  0x17   :  { %192 = vmatpush.msra.mxu1 %v187_v25  ;;  %271 = vmatpush.msra.mxu3 %v187_v25  ;;  %v183_v29 = vld [vmem:[#allocation8 + $0x58] sm:$0xff]  ;;  %v182_v30 = vld [vmem:[#allocation8 + $0x50] sm:$0xff]  ;;  %v181_v31 = vld [vmem:[#allocation8 + $0x48] sm:$0xff] }
  0x18   :  { %101 = vmatpush.msra.mxu0 %v88_v4  ;;  %259 = vmatpush.msra.mxu2 %v88_v4  ;;  %v180_v32 = vld [vmem:[#allocation8 + $0x40] sm:$0xff]  ;;  %v179_v33 = vld [vmem:[#allocation8 + $0x38] sm:$0xff]  ;;  %v178_v34 = vld [vmem:[#allocation8 + $0x30] sm:$0xff] }
  0x19   :  { %193 = vmatpush.msra.mxu1 %v186_v26  ;;  %272 = vmatpush.msra.mxu3 %v186_v26  ;;  %v177_v35 = vld [vmem:[#allocation8 + $0x28] sm:$0xff]  ;;  %v176_v36 = vld [vmem:[#allocation8 + $0x20] sm:$0xff]  ;;  %v175_v37 = vld [vmem:[#allocation8 + $0x18] sm:$0xff] }
  0x1a   :  { %102 = vmatpush.msra.mxu0 %v87_v5  ;;  %260 = vmatpush.msra.mxu2 %v87_v5  ;;  %v174_v38 = vld [vmem:[#allocation8 + $0x10] sm:$0xff]  ;;  %v173_v40 = vld [vmem:[#allocation8 + $0x8] sm:$0xff]  ;;  %v172_v41 = vld [vmem:[#allocation8] sm:$0xff] }
  0x1b   :  { %194 = vmatpush.msra.mxu1 %v185_v27  ;;  %273 = vmatpush.msra.mxu3 %v185_v27 }
  0x1c   :  { %103 = vmatpush.msra.mxu0 %v86_v6  ;;  %261 = vmatpush.msra.mxu2 %v86_v6 }
  0x1d   :  { %195 = vmatpush.msra.mxu1 %v184_v28  ;;  %274 = vmatpush.msra.mxu3 %v184_v28 }
  0x1e   :  { %104 = vmatpush.msra.mxu0 %v85_v7  ;;  %262 = vmatpush.msra.mxu2 %v85_v7 }
  0x1f   :  { %196 = vmatpush.msra.mxu1 %v183_v29  ;;  %275 = vmatpush.msra.mxu3 %v183_v29 }
  0x20   :  { %105 = vmatpush.msra.mxu0 %v84_v8  ;;  %263 = vmatpush.msra.mxu2 %v84_v8 }
  0x21   :  { %197 = vmatpush.msra.mxu1 %v182_v30  ;;  %276 = vmatpush.msra.mxu3 %v182_v30 }
  0x22   :  { %106 = vmatpush.msra.mxu0 %v83_v9  ;;  %264 = vmatpush.msra.mxu2 %v83_v9 }
  0x23   :  { %198 = vmatpush.msra.mxu1 %v181_v31  ;;  %277 = vmatpush.msra.mxu3 %v181_v31 }
  0x24   :  { %107 = vmatpush.msra.mxu0 %v82_v10  ;;  %265 = vmatpush.msra.mxu2 %v82_v10 }
  0x25   :  { %199 = vmatpush.msra.mxu1 %v180_v32  ;;  %278 = vmatpush.msra.mxu3 %v180_v32 }
  0x26   :  { %108 = vmatpush.msra.mxu0 %v81_v11  ;;  %266 = vmatpush.msra.mxu2 %v81_v11  ;;  %v295_v11 = vld [vmem:[%s524_s4] ss:$0 sm:$0xff] }
  0x27   :  { %200 = vmatpush.msra.mxu1 %v179_v33  ;;  %279 = vmatpush.msra.mxu3 %v179_v33 }
  0x28   :  { %109 = vmatpush.msra.mxu0 %v80_v12  ;;  %267 = vmatpush.msra.mxu2 %v80_v12 }
  0x29   :  { %201 = vmatpush.msra.mxu1 %v178_v34  ;;  %280 = vmatpush.msra.mxu3 %v178_v34 }
  0x2a   :  { %110 = vmatpush.msra.mxu0 %v79_v13  ;;  %268 = vmatpush.msra.mxu2 %v79_v13 }
  0x2b   :  { %202 = vmatpush.msra.mxu1 %v177_v35  ;;  %281 = vmatpush.msra.mxu3 %v177_v35 }
  0x2c   :  { %111 = vmatpush.msra.mxu0 %v78_v14  ;;  %269 = vmatpush.msra.mxu2 %v78_v14 }
  0x2d   :  { %203 = vmatpush.msra.mxu1 %v176_v36  ;;  %282 = vmatpush.msra.mxu3 %v176_v36 }
  0x2e   :  { %112 = vmatpush.msra.mxu0 %v77_v15  ;;  %270 = vmatpush.msra.mxu2 %v77_v15 }
  0x2f   :  { %113 = vmatmul.f32.vlgmr.msra.gmra.mxu0 %v75_v16  ;;  %116 = vmatmul.f32.vlgmr.msra.gmra.mxu2 %v76_v17 }
  0x30   :  { %204 = vmatpush.msra.mxu1 %v175_v37  ;;  %283 = vmatpush.msra.mxu3 %v175_v37 }
  0x32   :  { %205 = vmatpush.msra.mxu1 %v174_v38  ;;  %284 = vmatpush.msra.mxu3 %v174_v38 }
  0x34   :  { %206 = vmatpush.msra.mxu1 %v173_v40  ;;  %285 = vmatpush.msra.mxu3 %v173_v40 }
  0x36   :  { %207 = vmatpush.msra.mxu1 %v172_v41  ;;  %286 = vmatpush.msra.mxu3 %v172_v41 }
  0xac   :  { %v114_v19 = vpop.f32.mrf.mxu0 }
  0xad   :  { %v491_v20 = vadd.f32 %v294_v18, %v114_v19 }
  0xaf   :  { %120 = vst [vmem:[#allocation10] sm:$0xff] %v491_v20  ;;  %122 = vadd.xlane.f32.xlu1 %v491_v20  ;;  %v128_v23 = vmul.f32 %v491_v20, %v491_v20 }
  0xb2   :  { %v117_v21 = vpop.f32.mrf.mxu2 }
  0xb3   :  { %v495_v22 = vadd.f32 %v294_v18, %v117_v21 }
  0xb5   :  { %121 = vst [vmem:[#allocation10 + $0x8] sm:$0xff] %v495_v22  ;;  %124 = vadd.xlane.f32.xlu0 %v495_v22  ;;  %v129_v24 = vmul.f32 %v495_v22, %v495_v22 }
  0xb6   :  { %242 = dma.vmem_to_hbm [thread:$0]  %s235_s13, 256, %s237_s16, [#allocation11], %s429_s29, %s429_s29, %s430_s30  }
  0xb7   :  { %130 = vadd.xlane.f32.xlu1 %v128_v23 }
  0xbd   :  { %132 = vadd.xlane.f32.xlu0 %v129_v24 }
 0x122   :  { %v123_v39 = vpop.xlane.xlu1 %122 }
 0x123   :  { %v126_v42 = vmul.f32 0.03125, %v123_v39 }
 0x125   :  { %v136_v44 = vmul.f32 %v126_v42, %v126_v42  ;;  %v142_v2 = vsub.f32 %v491_v20, %v126_v42 }
 0x128   :  { %v125_v43 = vpop.xlane.xlu0 %124 }
 0x129   :  { %v127_v47 = vmul.f32 0.03125, %v125_v43 }
 0x12a   :  { %v131_v45 = vpop.xlane.xlu1 %130 }
 0x12b   :  { %v134_v46 = vmul.f32 0.03125, %v131_v45  ;;  %v137_v51 = vmul.f32 %v127_v47, %v127_v47  ;;  %v143_v8 = vsub.f32 %v495_v22, %v127_v47 }
 0x12d   :  { %v138_v48 = vsub.f32 %v134_v46, %v136_v44 }
 0x12f   :  { %v140_v49 = vmax.f32 %v138_v48, 0.0 }
 0x130   :  { %v133_v50 = vpop.xlane.xlu0 %132 }
 0x131   :  { %v144_v52 = vadd.f32 1e-05, %v140_v49  ;;  %v135_v53 = vmul.f32 0.03125, %v133_v50 }
 0x133   :  { %296 = vrsqrt.f32 %v144_v52  ;;  %v139_v54 = vsub.f32 %v135_v53, %v137_v51  ;;  %vm152_vm0 = vweird.f32 %v144_v52 }
 0x135   :  { %v141_v55 = vmax.f32 %v139_v54, 0.0 }
 0x137   :  { %v145_v56 = vadd.f32 1e-05, %v141_v55 }
 0x139   :  { %v297_v57 = vpop.eup %296  ;;  %298 = vrsqrt.f32 %v145_v56  ;;  %vm162_vm4 = vweird.f32 %v145_v56 }
 0x13a   :  { %v147_v58 = vmul.f32 %v297_v57, %v144_v52  ;;  %vm153_vm1 = vweird.f32 %v297_v57 }
 0x13b   :  { %vm154_vm2 = vmor %vm152_vm0, %vm153_vm1 }
 0x13c   :  { %v148_v59 = vmul.f32 %v297_v57, %v147_v58 }
 0x13e   :  { %v149_v60 = vmul.f32 0.5, %v148_v59 }
 0x13f   :  { %v299_v61 = vpop.eup %298 }
 0x140   :  { %v157_v62 = vmul.f32 %v299_v61, %v145_v56  ;;  %v150_v63 = vsub.f32 1.5, %v149_v60  ;;  %vm163_vm3 = vweird.f32 %v299_v61 }
 0x141   :  { %vm164_vm5 = vmor %vm162_vm4, %vm163_vm3 }
 0x142   :  { %v158_v0 = vmul.f32 %v299_v61, %v157_v62  ;;  %v151_v1 = vmul.f32 %v297_v57, %v150_v63 }
 0x144   :  { %v155_v3 = vsel %vm154_vm2, %v297_v57, %v151_v1  ;;  %v159_v4 = vmul.f32 0.5, %v158_v0 }
 0x145   :  { %v166_v5 = vmul.f32 %v155_v3, %v142_v2 }
 0x146   :  { %v160_v6 = vsub.f32 1.5, %v159_v4 }
 0x147   :  { %208 = vmatmul.f32.vlgmr.msra.gmra.mxu1 %v166_v5 }
 0x148   :  { %v161_v7 = vmul.f32 %v299_v61, %v160_v6 }
 0x14a   :  { %v165_v9 = vsel %vm164_vm5, %v299_v61, %v161_v7 }
 0x14b   :  { %v167_v10 = vmul.f32 %v165_v9, %v143_v8 }
 0x14d   :  { %211 = vmatmul.f32.vlgmr.msra.gmra.mxu3 %v167_v10 }
 0x1c4   :  { %v209_v12 = vpop.f32.mrf.mxu1 }
 0x1c5   :  { %v210_v13 = vadd.f32 %v295_v11, %v209_v12 }
 0x1c7   :  { %215 = vst [vmem:[#allocation9] sm:$0xff] %v210_v13 }
 0x1d0   :  { %v212_v14 = vpop.f32.mrf.mxu3 }
 0x1d1   :  { %v213_v15 = vadd.f32 %v295_v11, %v212_v14 }
 0x1d3   :  { %216 = vst [vmem:[#allocation9 + $0x8] sm:$0xff] %v213_v15 }
 0x1d4   :  { %229 = dma.vmem_to_hbm [thread:$0]  %s222_s20, 256, %s224_s23, [#allocation5], %s429_s29, %s429_s29, %s430_s30  }
 0x1d5   :  { %424 = dma.done.wait [#allocation5], 256  }
 0x1d6   :  { %425 = vsyncadd [#allocation5], 4294967040 }
 0x1d7   :  { %426 = dma.done.wait [#allocation11], 256  }
 0x1d8   :  { %427 = vsyncadd [#allocation11], 4294967040 }
 0x1d9   :  { %251 = vsyncpa [#allocation4], 1 }
 0x1da   :  { %252 = vsyncpa [#allocation7], 1 }
 0x1db   :  { %253 = vsyncpa [#allocation5], 1 }
 0x1dc   :  { %254 = vsyncpa [#allocation11], 1 }

</bundles_post_ra>
